<compile_context>
chip_gen: v7x
topology: tpu7x:2x2x1
jax: 0.10.0
libtpu: 0.0.40
codegen_flags: <defaults>
</compile_context>

<pallas_src>
import functools

import jax
import jax.numpy as jnp
from jax import lax
from jax.experimental import pallas as pl
from jax.experimental.pallas import tpu as pltpu

LANES = 128
SUBLANES = 8
MAX_TILE_ROWS = 4096  # 4096 * 128 * 4 B = 2 MiB per f32 input block


def _iou_kernel(pr_ref, gt_ref, out_ref, acc_inter, acc_sum,
                *, threshold, eps, total_rows, tile_rows, acc_rows):
    i = pl.program_id(0)

    @pl.when(i == 0)
    def _init():
        acc_inter[...] = jnp.zeros_like(acc_inter)
        acc_sum[...] = jnp.zeros_like(acc_sum)

    # Cast per-tile inside the kernel (cheap, hidden under DMA) and threshold.
    pr = (pr_ref[...].astype(jnp.float32) > jnp.float32(threshold)).astype(jnp.float32)
    gt = gt_ref[...].astype(jnp.float32)

    # Mask rows of a partial last block (static no-op when the grid divides
    # evenly — e.g. the demo shape). Out-of-bounds block contents are garbage,
    # so select exact zeros before summing.
    if total_rows % tile_rows != 0:
        row_ids = lax.broadcasted_iota(jnp.int32, (tile_rows, LANES), 0)
        in_bounds = row_ids < (total_rows - i * tile_rows)
        zero = jnp.float32(0.0)
        pr = jnp.where(in_bounds, pr, zero)
        gt = jnp.where(in_bounds, gt, zero)

    def partial_sum(x):
        # Reduce only the vreg-group axis -> (acc_rows, 128) lane-resident
        # partial (pure VPU adds; no cross-lane reduction per step).
        if acc_rows == 1:
            return x.sum(axis=0, keepdims=True)
        return x.reshape(-1, acc_rows, LANES).sum(axis=0)

    acc_inter[...] += partial_sum(gt * pr)   # running sum(gt * pr)
    acc_sum[...] += partial_sum(gt + pr)     # running sum(gt) + sum(pr)

    @pl.when(i == pl.num_programs(0) - 1)
    def _finalize():
        inter = jnp.sum(acc_inter[...])
        total = jnp.sum(acc_sum[...])
        union = total - inter + jnp.float32(eps)
        out_ref[0, 0] = (inter + jnp.float32(eps)) / union


def iou_loss(probs, targets, *, eps=1.0, threshold=0.5):
    """IoU score over thresholded probs; matches IouLoss.forward (ignore_channels=None)."""
    assert probs.shape == targets.shape
    orig_dtype = probs.dtype

    p = probs.reshape(-1)
    g = targets.reshape(-1)
    n = p.shape[0]

    # Rare odd-size case only: pad to a multiple of 128 so the (rows, 128)
    # reshape stays a free metadata op. probs is padded with `threshold`
    # (strict `>` never fires on the pad for any threshold); targets with 0.
    rem = (-n) % LANES
    if rem:
        p = jnp.pad(p, (0, rem), constant_values=threshold)
        g = jnp.pad(g, (0, rem), constant_values=0)
    rows = (n + rem) // LANES
    p2 = p.reshape(rows, LANES)
    g2 = g.reshape(rows, LANES)

    # Block sizing: full array if it is small, else 2 MiB-class blocks.
    tile_rows = rows if rows <= MAX_TILE_ROWS else MAX_TILE_ROWS
    acc_rows = SUBLANES if tile_rows % SUBLANES == 0 else 1
    grid = (pl.cdiv(rows, tile_rows),)

    kernel = functools.partial(
        _iou_kernel,
        threshold=float(threshold),
        eps=float(eps),
        total_rows=rows,
        tile_rows=tile_rows,
        acc_rows=acc_rows,
    )

    cost = pl.CostEstimate(
        flops=4 * n,
        transcendentals=0,
        bytes_accessed=n * (p2.dtype.itemsize + g2.dtype.itemsize) + 4,
    )

    score = pl.pallas_call(
        kernel,
        out_shape=jax.ShapeDtypeStruct((1, 1), jnp.float32),
        grid_spec=pltpu.PrefetchScalarGridSpec(
            num_scalar_prefetch=0,
            grid=grid,
            in_specs=[
                pl.BlockSpec((tile_rows, LANES), lambda i: (i, 0)),
                pl.BlockSpec((tile_rows, LANES), lambda i: (i, 0)),
            ],
            out_specs=pl.BlockSpec(memory_space=pltpu.SMEM),
            scratch_shapes=[
                pltpu.VMEM((acc_rows, LANES), jnp.float32),  # intersection
                pltpu.VMEM((acc_rows, LANES), jnp.float32),  # sum(gt) + sum(pr)
            ],
        ),
        compiler_params=pltpu.CompilerParams(
            # Sequential reduction over tiles (accumulator carried across steps).
            dimension_semantics=("arbitrary",),
        ),
        cost_estimate=cost,
    )(p2, g2)

    return score[0, 0].astype(orig_dtype)


def _reference(probs, targets, eps=1.0, threshold=0.5):
    pr = (probs > threshold).astype(probs.dtype)
    gt = targets
    inter = jnp.sum(gt * pr)
    union = jnp.sum(gt) + jnp.sum(pr) - inter + eps
    return (inter + eps) / union


if __name__ == "__main__":
    key = jax.random.PRNGKey(0)
    k1, k2 = jax.random.split(key)
    # NCHW, small shapes: batch=2, channels=4, spatial=16x16
    probs = jax.random.uniform(k1, (2, 4, 16, 16), dtype=jnp.float32)
    targets = (jax.random.uniform(k2, (2, 4, 16, 16)) > 0.5).astype(jnp.float32)

    iou_fn = jax.jit(functools.partial(iou_loss, eps=1.0, threshold=0.5))
    score = iou_fn(probs, targets)
    score = jax.block_until_ready(score)

    ref = _reference(probs, targets)
    assert jnp.allclose(score, ref, rtol=1e-5, atol=1e-5), (score, ref)
    print("KERNEL_OK")
</pallas_src>

<mosaic_0001>
module attributes {stable_mosaic.version = 11 : i64} {
  func.func @_iou_kernel(%arg0: i32, %arg1: memref<16x128xf32, #tpu.memory_space<vmem>>, %arg2: memref<16x128xf32, #tpu.memory_space<vmem>>, %arg3: memref<1x1xf32, #tpu.memory_space<smem>>, %arg4: memref<8x128xf32, #tpu.memory_space<vmem>>, %arg5: memref<8x128xf32, #tpu.memory_space<vmem>>) attributes {dimension_semantics = [#tpu.dimension_semantics<arbitrary>], iteration_bounds = array<i64: 1>, scalar_prefetch = 0 : i64, scratch_operands = 2 : i64, tpu.core_type = #tpu.core_type<tc>, window_params = [{transform_indices = @transform_0, window_bounds = array<i64: 16, 128>}, {transform_indices = @transform_1, window_bounds = array<i64: 16, 128>}, {transform_indices = @transform_2, window_bounds = array<i64: 1, 1>}]} {
    %c0_i32 = arith.constant 0 : i32
    %0 = arith.cmpi eq, %arg0, %c0_i32 : i32
    %1 = arith.extui %0 : i1 to i32
    %c0_i32_0 = arith.constant 0 : i32
    %2 = arith.cmpi ne, %1, %c0_i32_0 : i32
    scf.if %2 {
      %cst_16 = arith.constant 0.000000e+00 : f32
      %24 = vector.broadcast %cst_16 : f32 to vector<8x128xf32>
      %c0_17 = arith.constant 0 : index
      %c0_18 = arith.constant 0 : index
      %25 = vector.load %arg4[%c0_17, %c0_18] : memref<8x128xf32, #tpu.memory_space<vmem>>, vector<8x128xf32>
      tpu.vector_store %arg4[%c0_17, %c0_18], %24 {strides = array<i32>} : memref<8x128xf32, #tpu.memory_space<vmem>>, vector<8x128xf32>,
      %cst_19 = arith.constant 0.000000e+00 : f32
      %26 = vector.broadcast %cst_19 : f32 to vector<8x128xf32>
      %c0_20 = arith.constant 0 : index
      %c0_21 = arith.constant 0 : index
      %27 = vector.load %arg5[%c0_20, %c0_21] : memref<8x128xf32, #tpu.memory_space<vmem>>, vector<8x128xf32>
      tpu.vector_store %arg5[%c0_20, %c0_21], %26 {strides = array<i32>} : memref<8x128xf32, #tpu.memory_space<vmem>>, vector<8x128xf32>,
    } else {
    }
    %c0 = arith.constant 0 : index
    %c0_1 = arith.constant 0 : index
    %3 = vector.load %arg1[%c0, %c0_1] : memref<16x128xf32, #tpu.memory_space<vmem>>, vector<16x128xf32>
    %cst = arith.constant 5.000000e-01 : f32
    %4 = vector.broadcast %cst : f32 to vector<16x128xf32>
    %5 = arith.cmpf ogt, %3, %4 : vector<16x128xf32>
    %6 = arith.extui %5 : vector<16x128xi1> to vector<16x128xi32>
    %7 = arith.sitofp %6 : vector<16x128xi32> to vector<16x128xf32>
    %c0_2 = arith.constant 0 : index
    %c0_3 = arith.constant 0 : index
    %8 = vector.load %arg2[%c0_2, %c0_3] : memref<16x128xf32, #tpu.memory_space<vmem>>, vector<16x128xf32>
    %c0_4 = arith.constant 0 : index
    %c0_5 = arith.constant 0 : index
    %9 = vector.load %arg4[%c0_4, %c0_5] : memref<8x128xf32, #tpu.memory_space<vmem>>, vector<8x128xf32>
    %10 = arith.mulf %8, %7 : vector<16x128xf32>
    %11 = vector.shape_cast %10 : vector<16x128xf32> to vector<2x8x128xf32>
    %cst_6 = arith.constant dense<0.000000e+00> : vector<8x128xf32>
    %12 = vector.multi_reduction <add>, %11, %cst_6 [0] : vector<2x8x128xf32> to vector<8x128xf32>
    %13 = arith.addf %9, %12 : vector<8x128xf32>
    %c0_7 = arith.constant 0 : index
    %c0_8 = arith.constant 0 : index
    %14 = vector.load %arg4[%c0_7, %c0_8] : memref<8x128xf32, #tpu.memory_space<vmem>>, vector<8x128xf32>
    tpu.vector_store %arg4[%c0_7, %c0_8], %13 {strides = array<i32>} : memref<8x128xf32, #tpu.memory_space<vmem>>, vector<8x128xf32>,
    %c0_9 = arith.constant 0 : index
    %c0_10 = arith.constant 0 : index
    %15 = vector.load %arg5[%c0_9, %c0_10] : memref<8x128xf32, #tpu.memory_space<vmem>>, vector<8x128xf32>
    %16 = arith.addf %8, %7 : vector<16x128xf32>
    %17 = vector.shape_cast %16 : vector<16x128xf32> to vector<2x8x128xf32>
    %cst_11 = arith.constant dense<0.000000e+00> : vector<8x128xf32>
    %18 = vector.multi_reduction <add>, %17, %cst_11 [0] : vector<2x8x128xf32> to vector<8x128xf32>
    %19 = arith.addf %15, %18 : vector<8x128xf32>
    %c0_12 = arith.constant 0 : index
    %c0_13 = arith.constant 0 : index
    %20 = vector.load %arg5[%c0_12, %c0_13] : memref<8x128xf32, #tpu.memory_space<vmem>>, vector<8x128xf32>
    tpu.vector_store %arg5[%c0_12, %c0_13], %19 {strides = array<i32>} : memref<8x128xf32, #tpu.memory_space<vmem>>, vector<8x128xf32>,
    %c0_i32_14 = arith.constant 0 : i32
    %21 = arith.cmpi eq, %arg0, %c0_i32_14 : i32
    %22 = arith.extui %21 : i1 to i32
    %c0_i32_15 = arith.constant 0 : i32
    %23 = arith.cmpi ne, %22, %c0_i32_15 : i32
    scf.if %23 {
      %c0_16 = arith.constant 0 : index
      %c0_17 = arith.constant 0 : index
      %24 = vector.load %arg4[%c0_16, %c0_17] : memref<8x128xf32, #tpu.memory_space<vmem>>, vector<8x128xf32>
      %25 = vector.shape_cast %24 : vector<8x128xf32> to vector<1x8x128xf32>
      %cst_18 = arith.constant dense<0.000000e+00> : vector<1xf32>
      %26 = vector.multi_reduction <add>, %25, %cst_18 [1, 2] : vector<1x8x128xf32> to vector<1xf32>
      %27 = vector.shape_cast %26 : vector<1xf32> to vector<1x1x1xf32>
      %28 = vector.extract %27[0, 0, 0] : f32 from vector<1x1x1xf32>
      %c0_19 = arith.constant 0 : index
      %c0_20 = arith.constant 0 : index
      %29 = vector.load %arg5[%c0_19, %c0_20] : memref<8x128xf32, #tpu.memory_space<vmem>>, vector<8x128xf32>
      %30 = vector.shape_cast %29 : vector<8x128xf32> to vector<1x8x128xf32>
      %cst_21 = arith.constant dense<0.000000e+00> : vector<1xf32>
      %31 = vector.multi_reduction <add>, %30, %cst_21 [1, 2] : vector<1x8x128xf32> to vector<1xf32>
      %32 = vector.shape_cast %31 : vector<1xf32> to vector<1x1x1xf32>
      %33 = vector.extract %32[0, 0, 0] : f32 from vector<1x1x1xf32>
      %34 = arith.subf %33, %28 : f32
      %cst_22 = arith.constant 1.000000e+00 : f32
      %35 = arith.addf %34, %cst_22 : f32
      %cst_23 = arith.constant 1.000000e+00 : f32
      %36 = arith.addf %28, %cst_23 : f32
      %37 = arith.divf %36, %35 : f32
      %c0_24 = arith.constant 0 : index
      %c0_25 = arith.constant 0 : index
      %38 = memref.load %arg3[%c0_24, %c0_25] : memref<1x1xf32, #tpu.memory_space<smem>>
      memref.store %37, %arg3[%c0_24, %c0_25] : memref<1x1xf32, #tpu.memory_space<smem>>
    } else {
    }
    return
  }
  func.func @transform_0(%arg0: i32) -> (i32, i32) {
    %c0_i32 = arith.constant 0 : i32
    %c0_i32_0 = arith.constant 0 : i32
    return %arg0, %c0_i32 : i32, i32
  }
  func.func @transform_1(%arg0: i32) -> (i32, i32) {
    %c0_i32 = arith.constant 0 : i32
    %c0_i32_0 = arith.constant 0 : i32
    return %arg0, %c0_i32 : i32, i32
  }
  func.func @transform_2(%arg0: i32) -> (i32, i32) {
    %c0_i32 = arith.constant 0 : i32
    %c0_i32_0 = arith.constant 0 : i32
    %c0_i32_1 = arith.constant 0 : i32
    return %c0_i32, %c0_i32_0 : i32, i32
  }
}

</mosaic_0001>

<bundles_post_ra>
// kernel: iou_loss.1
= control target key start
LH: loop header
LB: loop body
LE: loop exit
PB: predicated region body
PF: predicated region fallthrough
CT: control target
= control target key end

     0   :  { %s150_s0 = inlined_call_operand.vmem [shape: f32[16,128], index: 0, kind: input, shape index: {}]   ;;  %s151_s1 = inlined_call_operand.vmem [shape: f32[16,128], index: 1, kind: input, shape index: {}]   ;;  %s152_s2 = inlined_call_operand.hbm [shape: f32[1,1], index: 2, kind: output, shape index: {}]  }
   0x1   :  { %v18_v0 = vld [vmem:[%s150_s0] sm:$0xff]  ;;  %v19_v1 = vld [vmem:[%s150_s0 + $0x8] sm:$0xff] }
   0x2   :  { %v26_v2 = vld [vmem:[%s151_s1] sm:$0xff]  ;;  %vm20_vm0 = vcmp.gt.f32.partialorder %v18_v0, 0.5  ;;  %vm21_vm1 = vcmp.gt.f32.partialorder %v19_v1, 0.5  ;;  %v27_v3 = vld [vmem:[%s151_s1 + $0x8] sm:$0xff] }
   0x3   :  { %7 = vsyncpa [#allocation5], 0  ;;  %v109_v4 = vmov 0.0   ;;  %s97_s24 = scalar_lea.hbm %s152_s2, 16 }
   0x4   :  { %v85_v5 = vsel %vm20_vm0, 1.0, %v109_v4  ;;  %v86_v6 = vsel %vm21_vm1, 1.0, %v109_v4  ;;  %p98_p0 = scmp.ne.s32.totalorder %s152_s2, %s97_s24  ;;  %p101_p1 = scmp.lt.u32.totalorder %s97_s24, %s152_s2 }
   0x5   :  { %v29_v7 = vmul.f32 %v85_v5, %v26_v2  ;;  %v30_v8 = vmul.f32 %v86_v6, %v27_v3  ;;  %v35_v9 = vadd.f32 %v85_v5, %v26_v2  ;;  %v36_v10 = vadd.f32 %v86_v6, %v27_v3 }
   0x6   :  { %p103_p2 = pnand %p101_p1, %p98_p0 }
   0x7   :  { %v31_v11 = vadd.f32 %v30_v8, %v29_v7  ;;  %v37_v12 = vadd.f32 %v36_v10, %v35_v9 }
   0x9   :  { %44 = vadd.xlane.f32.xlu0 %v31_v11 }
   0xd   :  { %54 = vadd.xlane.f32.xlu0 %v37_v12 }
  0x96   :  { %v45_v13 = vpop.xlane.xlu0 %44 }
  0x97   :  { %v46_v14 = vrot.slane %v45_v13, 4 }
  0x99   :  { %v47_v15 = vadd.f32 %v46_v14, %v45_v13 }
  0x9a   :  { %v55_v16 = vpop.xlane.xlu0 %54 }
  0x9b   :  { %v48_v17 = vrot.slane %v47_v15, 2  ;;  %v56_v18 = vrot.slane %v55_v16, 4 }
  0x9d   :  { %v57_v19 = vadd.f32 %v56_v18, %v55_v16  ;;  %v49_v20 = vadd.f32 %v48_v17, %v47_v15 }
  0x9f   :  { %v58_v21 = vrot.slane %v57_v19, 2  ;;  %v50_v22 = vrot.slane %v49_v20, 1 }
  0xa1   :  { %v59_v23 = vadd.f32 %v58_v21, %v57_v19  ;;  %v51_v24 = vadd.f32 %v50_v22, %v49_v20 }
  0xa3   :  { %87 = vpush %v51_v24  ;;  %v60_v25 = vrot.slane %v59_v23, 1 }
  0xa5   :  { %v61_v26 = vadd.f32 %v60_v25, %v59_v23 }
  0xa7   :  { %89 = vpush %v61_v26 }
  0xd4   :  { %s88_s0 = spop %87 }
  0xd5   :  { %s65_s19 = sadd.f32 1.0, %s88_s0 }
  0xd8   :  { %s90_s1 = spop %89 }
  0xd9   :  { %s63_s17 = ssub.f32 %s90_s1, %s88_s0 }
  0xdb   :  { %s64_s18 = sadd.f32 1.0, %s63_s17 }
  0xdd   :  { %v66_v27 = vstv %s64_s18 }
  0xde   :  { %95 = vrcp.f32 %v66_v27 }
  0xe8   :  { %v96_v28 = vpop.eup %95 }
  0xe9   :  { %91 = vpush %v96_v28 }
 0x11a   :  { %s92_s20 = spop %91 }
 0x11b   :  { %s69_s21 = smul.f32 %s92_s20, %s65_s19 }
 0x11d   :  { %71 = sst [smem:[#allocation4]] %s69_s21 }
 0x11e   :  { %106 = shalt.err (!%p103_p2)
}
 0x11f   :  { %s110_s29 = smov [#allocation4]  }
 0x120   :  { %79 = dma.smem_to_hbm %s110_s29, 16, %s152_s2, [#allocation5]  }
 0x121   :  { %107 = dma.done.wait [#allocation5], 16  }
 0x122   :  { %108 = vsyncadd [#allocation5], 4294967280 }
 0x123   :  { %83 = sfence }
 0x124   :  { %84 = vsyncpa [#allocation5], 1 }

</bundles_post_ra>
